<compile_context>
chip_gen: v7x
topology: tpu7x:2x2x1
jax: 0.10.0
libtpu: 0.0.40
codegen_flags: <defaults>
</compile_context>

<pallas_src>
import functools

import jax
import jax.numpy as jnp
from jax.experimental import pallas as pl
from jax.experimental.pallas import tpu as pltpu

# Max key-tile for the in-kernel online-softmax loop (bounds [Tk, N] f32 intermediates).
_MAX_KEY_TILE = 512


def _tpu_config():
    """Return (lane_tile, vmem_limit_bytes), generation aware.

    v5e/v6e have 128 MiB VMEM -> big lane tiles + high scoped limit; v7x has 64 MiB.
    """
    vmem_cap = 128 * 1024 * 1024
    try:
        vmem_cap = int(pltpu.get_tpu_info().vmem_capacity_bytes)
    except Exception:  # not on TPU / field unavailable: conservative default
        pass
    if vmem_cap >= 100 * 1024 * 1024:      # v5e / v6e
        return 1024, 96 * 1024 * 1024
    return 512, 40 * 1024 * 1024           # v7x


# ----------------------------------------------------------------------------
# Kernel 1: fused QKV + raw relative-logits projection (1x1 conv == matmul)
# ----------------------------------------------------------------------------
def _proj_kernel(w0_ref, w1_ref, x_ref, qkv_ref, rel_ref):
    x = x_ref[0]                                   # [C, TN]
    qkv_ref[0] = jnp.dot(w0_ref[...], x, preferred_element_type=jnp.float32
                         ).astype(qkv_ref.dtype)
    rel_ref[0] = jnp.dot(w1_ref[...], x, preferred_element_type=jnp.float32
                         ).astype(rel_ref.dtype)


def qkv_rel_projection(x, w_qkv, w_rel):
    """x: [B, C, N], w_qkv: [3*inner, C], w_rel: [2*heads*(2f-1), C]
    -> (qkv [B, 3*inner, N] in x.dtype, raw_rel [B, 2*heads*(2f-1), N] in f32)."""
    b, c, n = x.shape
    o0 = w_qkv.shape[0]
    o1 = w_rel.shape[0]
    lane_tile, vmem_limit = _tpu_config()
    tn = n if n <= lane_tile else lane_tile
    # TODO(synk): for N < 128 the lane tile is sub-128 (masked vst stores); pad N or
    # merge batches per grid step for production small-fmap configs.
    grid = (b, pl.cdiv(n, tn))
    bytes_acc = (x.size * x.dtype.itemsize
                 + b * n * (o0 * x.dtype.itemsize + o1 * 4)
                 + (o0 + o1) * c * x.dtype.itemsize)
    # NOTE: weight BlockSpecs have constant block index, so the pipeline elides their
    # re-fetch across steps.  TODO(synk): mark them pipeline_mode=pl.Buffered(1) to also
    # drop the second (never-used) buffer on v7x's tighter VMEM.
    return pl.pallas_call(
        _proj_kernel,
        out_shape=(jax.ShapeDtypeStruct((b, o0, n), x.dtype),
                   jax.ShapeDtypeStruct((b, o1, n), jnp.float32)),
        grid=grid,
        in_specs=[
            pl.BlockSpec((o0, c), lambda i, j: (0, 0)),
            pl.BlockSpec((o1, c), lambda i, j: (0, 0)),
            pl.BlockSpec((1, c, tn), lambda i, j: (i, 0, j)),
        ],
        out_specs=(pl.BlockSpec((1, o0, tn), lambda i, j: (i, 0, j)),
                   pl.BlockSpec((1, o1, tn), lambda i, j: (i, 0, j))),
        compiler_params=pltpu.CompilerParams(
            dimension_semantics=("parallel", "parallel"),
            vmem_limit_bytes=vmem_limit),
        cost_estimate=pl.CostEstimate(
            flops=2 * b * n * c * (o0 + o1), transcendentals=0,
            bytes_accessed=bytes_acc),
    )(w_qkv, w_rel, x)


# ----------------------------------------------------------------------------
# Kernel 2: per-(batch, head) attention with fused rel-pos bias + online softmax
# ----------------------------------------------------------------------------
def _attn_kernel(qkv_ref, lh_ref, lw_ref, th_ref, tw_ref, o_ref,
                 acat_ref, bcat_ref, *, dim_head, key_tile):
    d = dim_head
    f = th_ref.shape[0]
    n = o_ref.shape[-1]

    # Fused bias: one contraction of depth (D + 2f) instead of sim + two padded
    # small-K bias matmuls.  Operands stay in the input dtype (bf16 in production).
    acat_ref[0:d, :] = qkv_ref[0, 0, 0]            # q (softmax scale folded into W_q)
    acat_ref[d:d + f, :] = lh_ref[0, 0]            # key-row bias logits  [f, Nq]
    acat_ref[d + f:d + 2 * f, :] = lw_ref[0, 0]    # key-col bias logits  [f, Nq]
    bcat_ref[0:d, :] = qkv_ref[0, 1, 0]            # k
    bcat_ref[d:d + f, :] = th_ref[...]             # key-row one-hot      [f, Nk]
    bcat_ref[d + f:d + 2 * f, :] = tw_ref[...]     # key-col one-hot      [f, Nk]
    a_cat = acat_ref[...]                          # [(D+2f), Nq]

    num_kt = n // key_tile

    def body(t, carry):
        m, l, acc = carry
        kv0 = pl.multiple_of(t * key_tile, key_tile)
        b_blk = bcat_ref[:, pl.ds(kv0, key_tile)]            # [(D+2f), Tk]
        v_blk = qkv_ref[0, 2, 0, :, pl.ds(kv0, key_tile)]    # [D, Tk]
        # sim_T[kj, qi] = q.k + bias  (keys on sublanes, queries on lanes)
        s = jax.lax.dot_general(b_blk, a_cat, (((0,), (0,)), ((), ())),
                                preferred_element_type=jnp.float32)   # [Tk, Nq] f32
        m_new = jnp.maximum(m, jnp.max(s, axis=0, keepdims=True))     # [1, Nq]
        alpha = jnp.exp(m - m_new)
        p = jnp.exp(s - m_new)
        l_new = alpha * l + jnp.sum(p, axis=0, keepdims=True)
        # PV: canonical [D, Tk] x [Tk, Nq] contraction -> no [N, N] transpose.
        acc_new = alpha * acc + jax.lax.dot_general(
            v_blk, p.astype(v_blk.dtype), (((1,), (0,)), ((), ())),
            preferred_element_type=jnp.float32)
        return m_new, l_new, acc_new

    m0 = jnp.full((1, n), -jnp.inf, jnp.float32)
    l0 = jnp.zeros((1, n), jnp.float32)
    acc0 = jnp.zeros((d, n), jnp.float32)
    m, l, acc = jax.lax.fori_loop(0, num_kt, body, (m0, l0, acc0),
                                  unroll=num_kt <= 8)
    o_ref[0] = (acc * pl.reciprocal(l, approx=True)).astype(o_ref.dtype)


def attention_core(qkv, lh_t, lw_t, th, tw, *, heads, dim_head):
    """qkv: [B, 3, heads, D, N]; lh_t/lw_t: [B, heads, f, N]; th/tw: [f, N]
    -> [B, heads*D, N]."""
    b = qkv.shape[0]
    n = qkv.shape[-1]
    f = th.shape[0]
    d = dim_head
    _, vmem_limit = _tpu_config()
    key_tile = _MAX_KEY_TILE if (n > _MAX_KEY_TILE and n % _MAX_KEY_TILE == 0) else n
    kern = functools.partial(_attn_kernel, dim_head=d, key_tile=key_tile)
    flops_per_head = 2 * n * n * (d + 2 * f) + 2 * n * n * d
    isz = qkv.dtype.itemsize
    return pl.pallas_call(
        kern,
        out_shape=jax.ShapeDtypeStruct((b, heads * d, n), qkv.dtype),
        grid=(b, heads),
        in_specs=[
            pl.BlockSpec((1, 3, 1, d, n), lambda i, hh: (i, 0, hh, 0, 0)),
            pl.BlockSpec((1, 1, f, n), lambda i, hh: (i, hh, 0, 0)),
            pl.BlockSpec((1, 1, f, n), lambda i, hh: (i, hh, 0, 0)),
            pl.BlockSpec((f, n), lambda i, hh: (0, 0)),
            pl.BlockSpec((f, n), lambda i, hh: (0, 0)),
        ],
        out_specs=pl.BlockSpec((1, d, n), lambda i, hh: (i, hh, 0)),
        scratch_shapes=[pltpu.VMEM((d + 2 * f, n), qkv.dtype),
                        pltpu.VMEM((d + 2 * f, n), qkv.dtype)],
        compiler_params=pltpu.CompilerParams(
            dimension_semantics=("parallel", "parallel"),
            vmem_limit_bytes=vmem_limit),
        cost_estimate=pl.CostEstimate(
            flops=b * heads * flops_per_head,
            transcendentals=b * heads * n * n,
            bytes_accessed=qkv.size * isz + b * heads * d * n * isz
                           + (lh_t.size + lw_t.size) * isz),
    )(qkv, lh_t, lw_t, th, tw)


# ----------------------------------------------------------------------------
# Relative position embedding glue (tiny tensors, plain JAX)
# ----------------------------------------------------------------------------
def relative_to_absolute(x):
    b, h, l, _ = x.shape
    col_pad = jnp.zeros((b, h, l, 1), x.dtype)
    x = jnp.concatenate([x, col_pad], axis=3)
    flat_x = x.reshape(b, h, l * 2 * l)
    flat_pad = jnp.zeros((b, h, l - 1), x.dtype)
    flat_x = jnp.concatenate([flat_x, flat_pad], axis=2)
    final = flat_x.reshape(b, h, l + 1, 2 * l - 1)
    return final[:, :, :l, l - 1:]


def _small_logits_from_raw(raw_h, raw_w, fmap_size):
    """raw_*: [B, heads, 2f-1, N] (query on lanes, already scaled)
    -> (lhT, lwT) each [B, heads, f, N] (lane-dense) in f32."""
    b, heads, _, n = raw_h.shape
    f = fmap_size

    def one_dir(raw, transpose_spatial):
        logits = raw.transpose(0, 1, 3, 2)                       # [b,h,N,2f-1]
        logits = logits.reshape(b, heads, f, f, 2 * f - 1)       # [b,h,x,y,r]
        if transpose_spatial:
            logits = logits.transpose(0, 1, 3, 2, 4)             # [b,h,y,x,r]
        logits = logits.reshape(b, heads * f, f, 2 * f - 1)
        logits = relative_to_absolute(logits)                    # rel -> abs
        logits = logits.reshape(b, heads, f, f, f)
        if transpose_spatial:
            logits = logits.transpose(0, 1, 3, 2, 4)
        return logits.reshape(b, heads, n, f)

    lw = one_dir(raw_w, transpose_spatial=False)
    lh = one_dir(raw_h, transpose_spatial=True)
    return (lh.transpose(0, 1, 3, 2).astype(jnp.float32),
            lw.transpose(0, 1, 3, 2).astype(jnp.float32))


def _expansion_matrices(fmap_size):
    """One-hot key-row / key-col expansion matrices [f, N]."""
    n = fmap_size * fmap_size
    rows = jnp.arange(fmap_size)[:, None]
    cols = jnp.arange(n)[None, :]
    th = (rows == cols // fmap_size).astype(jnp.float32)
    tw = (rows == cols % fmap_size).astype(jnp.float32)
    return th, tw


def _prepare_projection_weights(w_qkv, rel_h, rel_w, *, heads, dim_head):
    """Fold the softmax scale into the q rows of w_qkv and pre-contract rel_h/rel_w
    with W_q so the projection kernel emits the raw rel logits directly.

    NOTE: channel order of w_qkv rows must be (qkv, head, dim_head) — this matches
    nn.Conv2d(dim, inner*3, 1, bias=False) + the reference's chunk/rearrange.
    """
    inner = heads * dim_head
    scale = dim_head ** -0.5
    w = w_qkv.astype(jnp.float32)
    wq = w[:inner] * scale                                  # fold scale once
    w_scaled = jnp.concatenate([wq, w[inner:]], axis=0)     # [3*inner, C]
    wq_h = wq.reshape(heads, dim_head, -1)                  # [heads, D, C]
    wrel_h = jnp.einsum("rd,hdc->hrc", rel_h.astype(jnp.float32), wq_h)
    wrel_w = jnp.einsum("rd,hdc->hrc", rel_w.astype(jnp.float32), wq_h)
    r = rel_h.shape[0]
    c = w.shape[1]
    w_rel = jnp.concatenate([wrel_h.reshape(heads * r, c),
                             wrel_w.reshape(heads * r, c)], axis=0)
    return w_scaled, w_rel


# ----------------------------------------------------------------------------
# Full forward (Pallas path)
# ----------------------------------------------------------------------------
def attention_forward(fmap, params, *, heads, dim_head, fmap_size):
    b, c, h, w = fmap.shape
    n = h * w
    inner = heads * dim_head
    dtype = fmap.dtype

    w_qkv_scaled, w_rel = _prepare_projection_weights(
        params["w_qkv"], params["rel_h"], params["rel_w"],
        heads=heads, dim_head=dim_head)

    x = fmap.reshape(b, c, n)                           # NCHW -> [B, C, N], free
    qkv_flat, raw = qkv_rel_projection(
        x, w_qkv_scaled.astype(dtype), w_rel.astype(dtype))
    qkv = qkv_flat.reshape(b, 3, heads, dim_head, n)    # contiguous reshape, free

    r = 2 * fmap_size - 1
    raw = raw.reshape(b, 2, heads, r, n)
    lh_t, lw_t = _small_logits_from_raw(raw[:, 0], raw[:, 1], fmap_size)
    th, tw = _expansion_matrices(fmap_size)

    out = attention_core(
        qkv, lh_t.astype(dtype), lw_t.astype(dtype),
        th.astype(dtype), tw.astype(dtype),
        heads=heads, dim_head=dim_head)                 # [B, inner, N]
    return out.reshape(b, inner, h, w)                  # NCHW out, free

# TODO(synk): fully fuse the projection into the attention kernel (keep W_qkv resident)
# to also remove the single qkv HBM write/read; needs the rel->abs shuffle in-kernel.
# TODO(synk): BottleBlock's surrounding 1x1 convs / BatchNorm / ReLU / SE / avg-pool /
# shortcut are standard XLA ops and intentionally stay outside the Pallas kernels.


# ----------------------------------------------------------------------------
# Pure-JAX reference mirroring the PyTorch forward (correctness check)
# ----------------------------------------------------------------------------
def relative_logits_1d(q, rel_k):
    b, heads, h, w, dim = q.shape
    logits = jnp.einsum("bhxyd,rd->bhxyr", q, rel_k) * (dim ** -0.5)
    logits = logits.reshape(b, heads * h, w, 2 * w - 1)
    logits = relative_to_absolute(logits)
    logits = logits.reshape(b, heads, h, w, w)
    logits = jnp.broadcast_to(logits[:, :, :, None, :, :], (b, heads, h, h, w, w))
    return logits


def rel_pos_bias(q, rel_h, rel_w, fmap_size):
    b, heads, n, d = q.shape
    x = y = fmap_size
    q5 = q.reshape(b, heads, x, y, d)
    lw = relative_logits_1d(q5, rel_w)
    lw = lw.transpose(0, 1, 2, 4, 3, 5).reshape(b, heads, n, n)
    q5t = q5.transpose(0, 1, 3, 2, 4)
    lh = relative_logits_1d(q5t, rel_h)
    lh = lh.transpose(0, 1, 4, 2, 5, 3).reshape(b, heads, n, n)
    return lw + lh


def attention_reference(fmap, params, *, heads, dim_head, fmap_size):
    b, c, h, w = fmap.shape
    n = h * w
    scale = dim_head ** -0.5
    x = fmap.reshape(b, c, n).transpose(0, 2, 1)
    qkv = jnp.einsum("bnc,oc->bno", x, params["w_qkv"])
    q, k, v = jnp.split(qkv, 3, axis=-1)

    def to_heads(t):
        return t.reshape(b, n, heads, dim_head).transpose(0, 2, 1, 3)

    q, k, v = map(to_heads, (q, k, v))
    sim = jnp.einsum("bhid,bhjd->bhij", q, k) * scale
    sim = sim + rel_pos_bias(q, params["rel_h"], params["rel_w"], fmap_size)
    attn = jax.nn.softmax(sim, axis=-1)
    out = jnp.einsum("bhij,bhjd->bhid", attn, v)
    out = out.reshape(b, heads, h, w, dim_head).transpose(0, 1, 4, 2, 3)
    return out.reshape(b, heads * dim_head, h, w)


if __name__ == "__main__":
    B, C = 2, 4
    FMAP = 8            # spatial 8x8 -> 64 tokens
    HEADS = 2
    DIM_HEAD = 16
    INNER = HEADS * DIM_HEAD
    SCALE = DIM_HEAD ** -0.5

    key = jax.random.PRNGKey(0)
    k1, k2, k3, k4 = jax.random.split(key, 4)
    params = {
        # nn.Conv2d(dim, inner*3, 1, bias=False) weight squeezed to [3*inner, C]
        "w_qkv": jax.random.normal(k1, (3 * INNER, C), jnp.float32) * 0.1,
        # RelativePositionEmbedding params: randn(2*fmap-1, dim_head) * dim_head^-0.5
        "rel_h": jax.random.normal(k2, (2 * FMAP - 1, DIM_HEAD), jnp.float32) * SCALE,
        "rel_w": jax.random.normal(k3, (2 * FMAP - 1, DIM_HEAD), jnp.float32) * SCALE,
    }
    fmap = jax.random.normal(k4, (B, C, FMAP, FMAP), jnp.float32)

    # float32 path
    out = attention_forward(fmap, params, heads=HEADS, dim_head=DIM_HEAD, fmap_size=FMAP)
    out = jax.block_until_ready(out)
    ref = attention_reference(fmap, params, heads=HEADS, dim_head=DIM_HEAD, fmap_size=FMAP)
    assert out.shape == (B, INNER, FMAP, FMAP), out.shape
    # tolerance accounts for the approx (EUP) reciprocal in the softmax denominator
    assert jnp.allclose(out, ref, atol=5e-3, rtol=5e-3), float(jnp.max(jnp.abs(out - ref)))

    # bf16 path (MXU dots in bf16, f32 softmax stats / accumulation in-kernel)
    fmap_bf16 = fmap.astype(jnp.bfloat16)
    params_bf16 = dict(params, w_qkv=params["w_qkv"].astype(jnp.bfloat16))
    out_bf16 = attention_forward(
        fmap_bf16, params_bf16, heads=HEADS, dim_head=DIM_HEAD, fmap_size=FMAP
    )
    out_bf16 = jax.block_until_ready(out_bf16)
    assert out_bf16.shape == (B, INNER, FMAP, FMAP), out_bf16.shape
    err_bf16 = float(jnp.max(jnp.abs(out_bf16.astype(jnp.float32) - ref)))
    assert jnp.allclose(out_bf16.astype(jnp.float32), ref, atol=5e-2, rtol=5e-2), err_bf16

    print("KERNEL_OK")
</pallas_src>

<mosaic_0001>
module attributes {stable_mosaic.version = 11 : i64} {
  func.func @_proj_kernel(%arg0: i32, %arg1: i32, %arg2: memref<96x4xf32, #tpu.memory_space<vmem>>, %arg3: memref<60x4xf32, #tpu.memory_space<vmem>>, %arg4: memref<1x4x64xf32, #tpu.memory_space<vmem>>, %arg5: memref<1x96x64xf32, #tpu.memory_space<vmem>>, %arg6: memref<1x60x64xf32, #tpu.memory_space<vmem>>) attributes {dimension_semantics = [#tpu.dimension_semantics<parallel>, #tpu.dimension_semantics<parallel>], iteration_bounds = array<i64: 2, 1>, scalar_prefetch = 0 : i64, scratch_operands = 0 : i64, tpu.core_type = #tpu.core_type<tc>, window_params = [{pipeline_mode = #tpu.pipeline_mode<synchronous>, transform_indices = @transform_0, window_bounds = array<i64: 96, 4>}, {pipeline_mode = #tpu.pipeline_mode<synchronous>, transform_indices = @transform_1, window_bounds = array<i64: 60, 4>}, {transform_indices = @transform_2, window_bounds = array<i64: 1, 4, 64>}, {transform_indices = @transform_3, window_bounds = array<i64: 1, 96, 64>}, {transform_indices = @transform_4, window_bounds = array<i64: 1, 60, 64>}]} {
    %c0 = arith.constant 0 : index
    %c0_0 = arith.constant 0 : index
    %c0_1 = arith.constant 0 : index
    %0 = vector.load %arg4[%c0, %c0_0, %c0_1] : memref<1x4x64xf32, #tpu.memory_space<vmem>>, vector<1x4x64xf32>
    %1 = vector.shape_cast %0 : vector<1x4x64xf32> to vector<4x64xf32>
    %c0_2 = arith.constant 0 : index
    %c0_3 = arith.constant 0 : index
    %2 = vector.load %arg2[%c0_2, %c0_3] : memref<96x4xf32, #tpu.memory_space<vmem>>, vector<96x4xf32>
    %cst = arith.constant dense<0.000000e+00> : vector<96x64xf32>
    %3 = tpu.matmul %2, %1, %cst {dimension_numbers = #tpu.dot_dimension_numbers<[1], [0], [0], [1], [0, 0, 1, 1], [], []>} : vector<96x4xf32>, vector<4x64xf32>, vector<96x64xf32> -> vector<96x64xf32>
    %c0_4 = arith.constant 0 : index
    %c0_5 = arith.constant 0 : index
    %c0_6 = arith.constant 0 : index
    %4 = vector.load %arg5[%c0_4, %c0_5, %c0_6] : memref<1x96x64xf32, #tpu.memory_space<vmem>>, vector<1x96x64xf32>
    %5 = vector.shape_cast %4 : vector<1x96x64xf32> to vector<96x64xf32>
    %6 = vector.shape_cast %3 : vector<96x64xf32> to vector<1x96x64xf32>
    tpu.vector_store %arg5[%c0_4, %c0_5, %c0_6], %6 {strides = array<i32>} : memref<1x96x64xf32, #tpu.memory_space<vmem>>, vector<1x96x64xf32>,
    %c0_7 = arith.constant 0 : index
    %c0_8 = arith.constant 0 : index
    %7 = vector.load %arg3[%c0_7, %c0_8] : memref<60x4xf32, #tpu.memory_space<vmem>>, vector<60x4xf32>
    %cst_9 = arith.constant dense<0.000000e+00> : vector<60x64xf32>
    %8 = tpu.matmul %7, %1, %cst_9 {dimension_numbers = #tpu.dot_dimension_numbers<[1], [0], [0], [1], [0, 0, 1, 1], [], []>} : vector<60x4xf32>, vector<4x64xf32>, vector<60x64xf32> -> vector<60x64xf32>
    %c0_10 = arith.constant 0 : index
    %c0_11 = arith.constant 0 : index
    %c0_12 = arith.constant 0 : index
    %9 = vector.load %arg6[%c0_10, %c0_11, %c0_12] : memref<1x60x64xf32, #tpu.memory_space<vmem>>, vector<1x60x64xf32>
    %10 = vector.shape_cast %9 : vector<1x60x64xf32> to vector<60x64xf32>
    %11 = vector.shape_cast %8 : vector<60x64xf32> to vector<1x60x64xf32>
    tpu.vector_store %arg6[%c0_10, %c0_11, %c0_12], %11 {strides = array<i32>} : memref<1x60x64xf32, #tpu.memory_space<vmem>>, vector<1x60x64xf32>,
    return
  }
  func.func @transform_0(%arg0: i32, %arg1: i32) -> (i32, i32) {
    %c0_i32 = arith.constant 0 : i32
    %c0_i32_0 = arith.constant 0 : i32
    %c0_i32_1 = arith.constant 0 : i32
    return %c0_i32, %c0_i32_0 : i32, i32
  }
  func.func @transform_1(%arg0: i32, %arg1: i32) -> (i32, i32) {
    %c0_i32 = arith.constant 0 : i32
    %c0_i32_0 = arith.constant 0 : i32
    %c0_i32_1 = arith.constant 0 : i32
    return %c0_i32, %c0_i32_0 : i32, i32
  }
  func.func @transform_2(%arg0: i32, %arg1: i32) -> (i32, i32, i32) {
    %c0_i32 = arith.constant 0 : i32
    %c0_i32_0 = arith.constant 0 : i32
    return %arg0, %c0_i32, %arg1 : i32, i32, i32
  }
  func.func @transform_3(%arg0: i32, %arg1: i32) -> (i32, i32, i32) {
    %c0_i32 = arith.constant 0 : i32
    %c0_i32_0 = arith.constant 0 : i32
    return %arg0, %c0_i32, %arg1 : i32, i32, i32
  }
  func.func @transform_4(%arg0: i32, %arg1: i32) -> (i32, i32, i32) {
    %c0_i32 = arith.constant 0 : i32
    %c0_i32_0 = arith.constant 0 : i32
    return %arg0, %c0_i32, %arg1 : i32, i32, i32
  }
}

</mosaic_0001>

<bundles_post_ra>
// kernel: tpu_custom_call.1
= control target key start
LH: loop header
LB: loop body
LE: loop exit
PB: predicated region body
PF: predicated region fallthrough
CT: control target
= control target key end

     0   :  { %10 = vsyncpa [#allocation3], 0  ;;  %s1582_s0 = inlined_call_operand.hbm [shape: f32[96,4], index: 0, kind: input, shape index: {}]   ;;  %s1583_s1 = inlined_call_operand.hbm [shape: f32[60,4], index: 1, kind: input, shape index: {}]   ;;  %s1584_s2 = inlined_call_operand.hbm [shape: f32[2,4,64], index: 2, kind: input, shape index: {}]   ;;  %s1585_s3 = inlined_call_operand.hbm [shape: f32[2,96,64], index: 3, kind: output, shape index: {0}]   ;;  %s1586_s4 = inlined_call_operand.hbm [shape: f32[2,60,64], index: 4, kind: output, shape index: {1}]  }
   0x1   :  { %11 = vsyncpa [#allocation6], 0 }
   0x2   :  { %12 = vsyncpa [#allocation4], 0 }
   0x3   :  { %14 = vsyncpa [#allocation4 + $0x1], 0 }
   0x4   :  { %15 = vsyncpa [#allocation10], 0 }
   0x5   :  { %17 = vsyncpa [#allocation10 + $0x1], 0  ;;  %s1220_s15 = smov 0   ;;  %s1222_s16 = smov 0  }
   0x6   :  { %s1224_s17 = smov 0   ;;  %s1226_s18 = smov 0  }
   0x7   :  { %s1228_s19 = smov 0   ;;  %s1230_s20 = smov 0  }
   0x8 LB: > { %s1251_s21 = sadd.s32 4294967295, %s1184_s20   ;;  %s783_s22 = sadd.s32 4294967294, %s1184_s20   ;;  %s1184_s20 = sphi %s1230_s20, %s23_s20   ;;  %s1180_s19 = sphi %s1228_s19, %s1609_s19   ;;  %s1176_s18 = sphi %s1226_s18, %s1608_s18   ;;  %s1172_s17 = sphi %s1224_s17, %s1607_s17   ;;  %s1168_s16 = sphi %s1222_s16, %s1606_s16   ;;  %s1164_s15 = sphi %s1220_s15, %s1605_s15  }
   0x9   : > { %p99_p0 = scmp.ne.s32.totalorder %s1168_s16, %s1164_s15  ;;  %p1587_p1 = scmp.eq.s32.totalorder %s1251_s21, 0 }
   0xa   : > { %p131_p3 = scmp.eq.s32.totalorder %s783_s22, 1  ;;  %p784_p5 = scmp.ge.s32.totalorder %s1184_s20, 1 }
   0xb   : > { %p1260_p4 = por %p1587_p1, %p99_p0  ;;  %p166_p7 = scmp.lt.s32.totalorder %s1184_s20, 3 }
   0xc   : > { %p1265_p6 = por %p131_p3, %p99_p0  ;;  %s1186_s26 = smov [#allocation2]  }
   0xd   : > { %s1590_s23 = scalar_select %p1260_p4, 1, 0 }
   0xe   : > { %s1591_s24 = scalar_select %p1265_p6, 1, 0 }
   0xf   : > { %p1270_p8 = pnand %p784_p5, %p166_p7  ;;  %s178_s27 = sshll.u32 %s1186_s26, 4  ;;  %s1274_s27 = int_to_ptr.vmem [resolvable:$true] %s178_s27 }
  0x10   : > { %s1187_s29 = smov [#allocation5]   ;;  %s976_s7 = scalar_lea.hbm %s1582_s0, 1536 }
  0x11   : > { %p898_p9 = pneg %p1270_p8  ;;  %s191_s30 = sshll.u32 %s1187_s29, 4  ;;  %s1285_s30 = int_to_ptr.vmem [resolvable:$true] %s191_s30 }
  0x12   : > { %p977_p12 = scmp.ne.s32.totalorder %s1582_s0, %s976_s7  ;;  %p983_p5 = scmp.lt.u32.totalorder %s976_s7, %s1582_s0 }
  0x13   : > { %p1281_p11 = pnand %p898_p9, %p1587_p1 }
  0x15   : > { %p978_p13 = pneg %p1281_p11 }
  0x17   : > { %p979_p0 = pnand %p978_p13, %p977_p12 }
  0x19   : > { %p980_p3 = pneg %p979_p0 }
  0x1b   : > { %p985_p7 = pnand %p983_p5, %p980_p3 }
  0x1d   : > { %988 = shalt.err (!%p985_p7)
}
  0x1e   : > { %s989_s12 = scalar_lea.vmem %s1274_s27, 1536  ;;  %p997_p2 = scmp.lt.s32.totalorder %s1274_s27, %s1274_s27 }
  0x1f   : > { %p990_p9 = scmp.ne.s32.totalorder %s1274_s27, %s989_s12  ;;  %p998_p12 = scmp.lt.s32.totalorder %s989_s12, %s989_s12 }
  0x21   : > { %p992_p10 = pnand %p990_p9, %p978_p13  ;;  %p999_p0 = por %p998_p12, %p997_p2 }
  0x23   : > { %p993_p1 = pneg %p992_p10 }
  0x25   : > { %p1000_p6 = pnand %p999_p0, %p993_p1 }
  0x27   : > { %1003 = shalt.err (!%p1000_p6)
}
  0x28   : > { %s1188_s13 = smov 128   ;;  %s1189_s14 = smov 8  }
  0x29   : > { %901 = dma.hbm_to_vmem [thread:$0]  (!%p1281_p11), %s1582_s0, 1536, %s1274_s27, [#allocation3], %s1188_s13, %s1188_s13, %s1189_s14  }
  0x2a   : > { %s1004_s6 = scalar_lea.hbm %s1583_s1, 1024 }
  0x2b   : > { %p1005_p2 = scmp.ne.s32.totalorder %s1583_s1, %s1004_s6  ;;  %p1011_p10 = scmp.lt.u32.totalorder %s1004_s6, %s1583_s1 }
  0x2d   : > { %p1007_p1 = pnand %p1005_p2, %p978_p13 }
  0x2f   : > { %p1008_p6 = pneg %p1007_p1 }
  0x31   : > { %p1013_p3 = pnand %p1011_p10, %p1008_p6 }
  0x33   : > { %1016 = shalt.err (!%p1013_p3)
}
  0x34   : > { %s1017_s27 = scalar_lea.vmem %s1285_s30, 1024  ;;  %p1025_p12 = scmp.lt.s32.totalorder %s1285_s30, %s1285_s30 }
  0x35   : > { %p1018_p5 = scmp.ne.s32.totalorder %s1285_s30, %s1017_s27  ;;  %p1026_p0 = scmp.lt.s32.totalorder %s1017_s27, %s1017_s27 }
  0x37   : > { %p1020_p7 = pnand %p1018_p5, %p978_p13  ;;  %p1027_p2 = por %p1026_p0, %p1025_p12 }
  0x39   : > { %p1021_p9 = pneg %p1020_p7 }
  0x3b   : > { %p1028_p1 = pnand %p1027_p2, %p1021_p9 }
  0x3d   : > { %1031 = shalt.err (!%p1028_p1)
}
  0x3e   : > { %904 = dma.hbm_to_vmem [thread:$0]  (!%p1281_p11), %s1583_s1, 1024, %s1285_s30, [#allocation6], %s1188_s13, %s1188_s13, %s1189_s14  }
  0x3f   : > { %s35_s22 = sadd.s32 1, %s1180_s19  ;;  %s86_s26 = sadd.s32 1, %s1172_s17 }
  0x40   : > { %p37_p13 = scmp.ge.s32.totalorder %s35_s22, 2  ;;  %p93_p6 = scmp.ne.s32.totalorder %s1172_s17, %s1168_s16 }
  0x41   : > { %p94_p10 = scmp.eq.s32.totalorder %s1184_s20, 0  ;;  %p918_p3 = scmp.lt.s32.totalorder %s1184_s20, 2 }
  0x42   : > { %s1611_s22 = smov (%p37_p13, %s35_s22), 0  ;;  %p1594_p7 = scmp.eq.s32.totalorder %s1251_s21, 1 }
  0x43   : > { %p95_p5 = por %p94_p10, %p93_p6  ;;  %s81_s29 = ssub.s32 %s1180_s19, %s1611_s22 }
  0x44   : > { %p1349_p9 = por %p1594_p7, %p93_p6  ;;  %s205_s5 = sand.u32 1, %s1184_s20  }
  0x45   : > { %p84_p12 = scmp.eq.s32.totalorder %s81_s29, 0  ;;  %s207_s6 = sand.u32 1, %s1172_s17  }
  0x46   : > { %s1595_s28 = scalar_select %p1349_p9, 1, 0 }
  0x47   : > { %s789_s30 = sshll.u32 %s1180_s19, 6  ;;  %s788_s14 = sshll.u32 %s207_s6, 2 }
  0x48   : > { %s1359_s13 = scalar_select %p84_p12, %s1172_s17, %s86_s26  }
  0x49   : > { %s1364_s9 = scalar_lea.hbm %s1584_s2, %s789_s30  ;;  %p1366_p11 = pnand %p918_p3, %p95_p5 }
  0x4a   : > { %s209_s27 = scalar_lea.vmem [#allocation7], %s788_s14  ;;  %s206_s12 = scalar_lea.sflag [#allocation3], %s205_s5 }
  0x4b   : > { %s217_s11 = sshll.u32 %s209_s27, 4  ;;  %s1032_s26 = scalar_lea.hbm %s1364_s9, 64  ;;  %s1370_s11 = int_to_ptr.vmem [resolvable:$true] %s217_s11 }
  0x4c   : > { %p1033_p0 = scmp.ne.s32.totalorder %s1364_s9, %s1032_s26  ;;  %p1034_p2 = pneg %p1366_p11 }
  0x4d   : > { %s1037_s30 = scalar_lea.hbm %s1584_s2, 128  ;;  %p1038_p6 = scmp.lt.u32.totalorder %s1364_s9, %s1584_s2 }
  0x4e   : > { %p1035_p1 = pnand %p1034_p2, %p1033_p0  ;;  %p1039_p10 = scmp.lt.u32.totalorder %s1037_s30, %s1032_s26 }
  0x4f   : > { %p1041_p5 = scmp.lt.u32.totalorder %s1032_s26, %s1364_s9 }
  0x50   : > { %p1036_p13 = pneg %p1035_p1  ;;  %p1040_p3 = por %p1039_p10, %p1038_p6 }
  0x52   : > { %p1042_p7 = por %p1041_p5, %p1040_p3 }
  0x54   : > { %p1043_p12 = pnand %p1042_p7, %p1036_p13 }
  0x56   : > { %1046 = shalt.err (!%p1043_p12)
}
  0x57   : > { %s1047_s5 = scalar_lea.vmem %s1370_s11, 64  ;;  %s1190_s14 = smov [#allocation7]  }
  0x58   : > { %p1048_p0 = scmp.ne.s32.totalorder %s1370_s11, %s1047_s5  ;;  %s1052_s27 = sshll.u32 %s1190_s14, 4  ;;  %s1053_s27 = int_to_ptr.vmem [resolvable:$false] %s1052_s27 }
  0x59   : > { %s1054_s29 = scalar_lea.vmem %s1053_s27, 128  ;;  %p1055_p4 = scmp.lt.s32.totalorder %s1370_s11, %s1053_s27 }
  0x5a   : > { %p1050_p1 = pnand %p1048_p0, %p1034_p2  ;;  %p1056_p6 = scmp.lt.s32.totalorder %s1054_s29, %s1047_s5 }
  0x5c   : > { %p1051_p9 = pneg %p1050_p1  ;;  %p1057_p10 = por %p1056_p6, %p1055_p4 }
  0x5e   : > { %p1058_p3 = pnand %p1057_p10, %p1051_p9 }
  0x60   : > { %1061 = shalt.err (!%p1058_p3)
}
  0x61   : > { %908 = dma.hbm_to_vmem [thread:$0]  (!%p1366_p11), %s1364_s9, 64, %s1370_s11, %s206_s12  }
  0x62   : > { %226 = sbr.rel (%p1270_p8) target bundleno = 386 (0x182), region = 32  ;;  %p1597_p2 = scmp.eq.s32.totalorder (!%p1270_p8), %s1251_s21, 0 }
  0x69   : > { %1143 = dma.done.wait (%p1597_p2), [#allocation3], 1536   ;;  %p1598_p13 = pmov %p1597_p2 }
  0x6a   : > { %p1599_p5 = pmov %p1597_p2 }
  0x6b   : > { %1145 = vsyncadd (%p1598_p13), [#allocation3], 4294965760 }
  0x6c   : > { %1147 = dma.done.wait (%p1599_p5), [#allocation6], 1024   ;;  %p1600_p4 = pmov %p1597_p2 }
  0x6d   : > { %s236_s10 = sand.u32 1, %s1251_s21   ;;  %s1409_s9 = sand.u32 1, %s1168_s16  }
  0x6e   : > { %1149 = vsyncadd (%p1600_p4), [#allocation6], 4294966272  ;;  %s793_s25 = sshll.u32 %s1409_s9, 2  ;;  %s237_s11 = scalar_lea.sflag [#allocation3], %s236_s10 }
  0x6f   : > { %s240_s12 = scalar_lea.vmem [#allocation7], %s793_s25  ;;  %p1601_p8 = scmp.ne.s32.totalorder %s1590_s23, 0 }
  0x71   : > { %1151 = dma.done.wait (%p1601_p8), %s237_s11, 64  }
  0x72   : > { %1153 = vsyncadd (%p1601_p8), %s237_s11, 4294967232  ;;  %vm320_vm0 = vcmask 1043456   ;;  %v270_v0 = vld [vmem:[%s240_s12] sm:$0xf]  ;;  %vm283_vm1 = vcmask 31744   ;;  %v281_v2 = vld [vmem:[#allocation2 + $0x50] sm:$0xff] }
  0x73   : > { %v271_v1 = vld [vmem:[#allocation2] sm:$0xff]  ;;  %846 = vmatprep.subr.msk.mxu0 %vm320_vm0, %v270_v0  ;;  %880 = vmatprep.subr.msk.mxu1 %vm320_vm0, %v270_v0  ;;  %v272_v3 = vld [vmem:[#allocation2 + $0x8] sm:$0xff]  ;;  %v282_v4 = vld [vmem:[#allocation2 + $0x58] sm:$0xff]  ;;  %s882_s21 = smul.u32 96, %s1409_s9  ;;  %vm449_vm2 = vcmask 523264   ;;  %s794_s23 = sshll.u32 %s1409_s9, 6 }
  0x74   : > { %847 = vmatpush3.msk.msra.mxu0 %vm320_vm0, %v270_v0  ;;  %881 = vmatpush3.msk.msra.mxu1 %vm320_vm0, %v270_v0  ;;  %v273_v5 = vld [vmem:[#allocation2 + $0x10] sm:$0xff]  ;;  %v462_v6 = vld [vmem:[#allocation5] sm:$0xff]  ;;  %v274_v7 = vld [vmem:[#allocation2 + $0x18] sm:$0xff]  ;;  %s1456_s6 = scalar_lea.vmem [#allocation9], %s794_s23  ;;  %s883_s7 = smul.u32 1536, %s1176_s18  ;;  %vm606_vm3 = vcmask 519168  }
  0x75   : > { %848 = vmatprep.mubr.msk.f32.mxu0 %vm283_vm1, %v271_v1  ;;  %863 = vmatprep.mubr.msk.f32.mxu1 %vm283_vm1, %v281_v2  ;;  %v463_v8 = vld [vmem:[#allocation5 + $0x8] sm:$0xff]  ;;  %v275_v9 = vld [vmem:[#allocation2 + $0x20] sm:$0xff]  ;;  %v464_v10 = vld [vmem:[#allocation5 + $0x10] sm:$0xff]  ;;  %s1444_s26 = scalar_lea.vmem [#allocation8], %s882_s21  ;;  %s645_s30 = sshll.u32 %s1456_s6, 4  ;;  %s1475_s30 = int_to_ptr.vmem [resolvable:$true] %s645_s30 }
  0x76   : > { %849 = vmatmul.mubr.msk.f32.vlgmr.msra.gmra.mrb[0].mxu0 %vm283_vm1, %v272_v3  ;;  %864 = vmatmul.mubr.msk.f32.vlgmr.msra.gmra.mrb[0].mxu1 %vm283_vm1, %v282_v4  ;;  %v276_v11 = vld [vmem:[#allocation2 + $0x28] sm:$0xff]  ;;  %v465_v12 = vld [vmem:[#allocation5 + $0x18] sm:$0xff]  ;;  %v277_v13 = vld [vmem:[#allocation2 + $0x30] sm:$0xff]  ;;  %s628_s8 = sshll.u32 %s1444_s26, 4  ;;  %s823_s5 = sshll.u32 %s1176_s18, 10  ;;  %s1491_s8 = int_to_ptr.vmem [resolvable:$true] %s628_s8 }
  0x77   : > { %866 = vmatprep.subr.msk.mxu1 %vm320_vm0, %v270_v0  ;;  %851 = vmatprep.mubr.msk.f32.mxu0 %vm283_vm1, %v273_v5  ;;  %v466_v14 = vld [vmem:[#allocation5 + $0x20] sm:$0xff]  ;;  %v278_v15 = vld [vmem:[#allocation2 + $0x38] sm:$0xff]  ;;  %v467_v16 = vld [vmem:[#allocation5 + $0x28] sm:$0xff]  ;;  %s1489_s29 = scalar_lea.hbm %s1585_s3, %s883_s7  ;;  %s1499_s18 = scalar_lea.hbm %s1586_s4, %s823_s5 }
  0x78   : > { %867 = vmatpush3.msk.msra.mxu1 %vm320_vm0, %v270_v0  ;;  %868 = vmatprep.mubr.msk.f32.mxu1 %vm283_vm1, %v462_v6  ;;  %v279_v17 = vld [vmem:[#allocation2 + $0x40] sm:$0xff]  ;;  %v468_v18 = vld [vmem:[#allocation5 + $0x30] sm:$0xff]  ;;  %v280_v19 = vld [vmem:[#allocation2 + $0x48] sm:$0xff]  ;;  %s609_s11 = scalar_lea.sflag [#allocation4], %s1409_s9  ;;  %s1062_s12 = scalar_lea.vmem %s1491_s8, 1536 }
  0x79   : > { %v469_v20 = vld [vmem:[#allocation5 + $0x38] sm:$0xf]  ;;  %p1063_p9 = scmp.ne.s32.totalorder %s1491_s8, %s1062_s12  ;;  %p1602_p11 = scmp.ne.s32.totalorder %s1595_s28, 0 }
  0x7a   : > { %852 = vmatmul.mubr.msk.f32.gmra.mrb[2].mxu0 %vm283_vm1, %v274_v7  ;;  %869 = vmatmul.mubr.msk.f32.vlgmr.msra.gmra.mrb[2].mxu1 %vm283_vm1, %v463_v8  ;;  %s1191_s21 = smov [#allocation8]  }
  0x7b   : > { %854 = vmatprep.mubr.msk.f32.mxu0 %vm283_vm1, %v275_v9  ;;  %871 = vmatprep.mubr.msk.f32.mxu1 %vm283_vm1, %v464_v10  ;;  %p1064_p7 = pnand %p1063_p9, %p1602_p11  ;;  %s1066_s23 = sshll.u32 %s1191_s21, 4  ;;  %s1067_s23 = int_to_ptr.vmem [resolvable:$false] %s1066_s23 }
  0x7c   : > { %s1068_s7 = scalar_lea.vmem %s1067_s23, 3072  ;;  %p1069_p0 = scmp.lt.s32.totalorder %s1491_s8, %s1067_s23 }
  0x7d   : > { %p1065_p12 = pneg %p1064_p7  ;;  %p1070_p1 = scmp.lt.s32.totalorder %s1068_s7, %s1062_s12 }
  0x7e   : > { %855 = vmatmul.mubr.msk.f32.gmra.mrb[4].mxu0 %vm283_vm1, %v276_v11  ;;  %872 = vmatmul.mubr.msk.f32.gmra.mrb[4].mxu1 %vm283_vm1, %v465_v12 }
  0x7f   : > { %857 = vmatprep.mubr.msk.f32.mxu0 %vm283_vm1, %v277_v13  ;;  %874 = vmatprep.mubr.msk.f32.mxu1 %vm283_vm1, %v466_v14  ;;  %p1071_p6 = por %p1070_p1, %p1069_p0 }
  0x81   : > { %p1072_p10 = pnand %p1071_p6, %p1065_p12 }
  0x82   : > { %858 = vmatmul.mubr.msk.f32.gmra.mrb[6].mxu0 %vm283_vm1, %v278_v15  ;;  %875 = vmatmul.mubr.msk.f32.gmra.mrb[6].mxu1 %vm283_vm1, %v467_v16 }
  0x83   : > { %860 = vmatprep.mubr.msk.f32.mxu0 %vm283_vm1, %v279_v17  ;;  %877 = vmatprep.mubr.msk.f32.mxu1 %vm283_vm1, %v468_v18 }
  0x86   : > { %861 = vmatmul.mubr.msk.f32.gmra.mrb[8].mxu0 %vm283_vm1, %v280_v19  ;;  %878 = vmatmul.mubr.msk.f32.gmra.mrb[8].mxu1 %vm283_vm1, %v469_v20 }
 0x149   : > { %v850_v21 = vpop.f32.mrb[0].mxu0  ;;  %v865_v22 = vpop.f32.mrb[0].mxu1 }
 0x14a   : > { %451 = vst.msk [vmem:[%s1444_s26 + $0x8] sm:$0xff] %vm449_vm2, %v850_v21  ;;  %461 = vst.msk [vmem:[%s1444_s26 + $0x58] sm:$0xff] %vm449_vm2, %v865_v22  ;;  %v390_v23 = vpop.f32.mrb[1].mxu0  ;;  %v440_v24 = vpop.f32.mrb[1].mxu1 }
 0x14b   : > { %450 = vst.msk [vmem:[%s1444_s26] sm:$0xff] %vm449_vm2, %v390_v23  ;;  %460 = vst.msk [vmem:[%s1444_s26 + $0x50] sm:$0xff] %vm449_vm2, %v440_v24 }
 0x14d   : > { %v853_v25 = vpop.f32.mrb[2].mxu0  ;;  %v870_v26 = vpop.f32.mrb[2].mxu1 }
 0x14e   : > { %453 = vst.msk [vmem:[%s1444_s26 + $0x18] sm:$0xff] %vm449_vm2, %v853_v25  ;;  %600 = vst.msk [vmem:[%s1456_s6 + $0x8] sm:$0xff] %vm449_vm2, %v870_v26  ;;  %v400_v27 = vpop.f32.mrb[3].mxu0  ;;  %v560_v28 = vpop.f32.mrb[3].mxu1 }
 0x14f   : > { %452 = vst.msk [vmem:[%s1444_s26 + $0x10] sm:$0xff] %vm449_vm2, %v400_v27  ;;  %599 = vst.msk [vmem:[%s1456_s6] sm:$0xff] %vm449_vm2, %v560_v28 }
 0x151   : > { %v856_v29 = vpop.f32.mrb[4].mxu0  ;;  %v873_v30 = vpop.f32.mrb[4].mxu1 }
 0x152   : > { %455 = vst.msk [vmem:[%s1444_s26 + $0x28] sm:$0xff] %vm449_vm2, %v856_v29  ;;  %602 = vst.msk [vmem:[%s1456_s6 + $0x18] sm:$0xff] %vm449_vm2, %v873_v30  ;;  %v410_v31 = vpop.f32.mrb[5].mxu0  ;;  %v570_v32 = vpop.f32.mrb[5].mxu1 }
 0x153   : > { %454 = vst.msk [vmem:[%s1444_s26 + $0x20] sm:$0xff] %vm449_vm2, %v410_v31  ;;  %601 = vst.msk [vmem:[%s1456_s6 + $0x10] sm:$0xff] %vm449_vm2, %v570_v32 }
 0x155   : > { %v859_v33 = vpop.f32.mrb[6].mxu0  ;;  %v876_v34 = vpop.f32.mrb[6].mxu1 }
 0x156   : > { %457 = vst.msk [vmem:[%s1444_s26 + $0x38] sm:$0xff] %vm449_vm2, %v859_v33  ;;  %604 = vst.msk [vmem:[%s1456_s6 + $0x28] sm:$0xff] %vm449_vm2, %v876_v34  ;;  %v420_v35 = vpop.f32.mrb[7].mxu0  ;;  %v580_v36 = vpop.f32.mrb[7].mxu1 }
 0x157   : > { %456 = vst.msk [vmem:[%s1444_s26 + $0x30] sm:$0xff] %vm449_vm2, %v420_v35  ;;  %603 = vst.msk [vmem:[%s1456_s6 + $0x20] sm:$0xff] %vm449_vm2, %v580_v36 }
 0x159   : > { %v862_v37 = vpop.f32.mrb[8].mxu0  ;;  %v879_v38 = vpop.f32.mrb[8].mxu1 }
 0x15a   : > { %459 = vst.msk [vmem:[%s1444_s26 + $0x48] sm:$0xff] %vm449_vm2, %v862_v37  ;;  %v430_v39 = vpop.f32.mrb[9].mxu0  ;;  %v590_v40 = vpop.f32.mrb[9].mxu1 }
 0x15b   : > { %607 = vst.msk [vmem:[%s1456_s6 + $0x38] sm:$0xf] %vm606_vm3, %v879_v38 }
 0x15c   : > { %458 = vst.msk [vmem:[%s1444_s26 + $0x40] sm:$0xff] %vm449_vm2, %v430_v39  ;;  %605 = vst.msk [vmem:[%s1456_s6 + $0x30] sm:$0xff] %vm449_vm2, %v590_v40 }
 0x15d   : > { %1075 = shalt.err (!%p1072_p10)
}
 0x15e   : > { %s1076_s26 = scalar_lea.hbm %s1489_s29, 1536  ;;  %s1080_s14 = scalar_lea.hbm %s1585_s3, 3072 }
 0x15f   : > { %p1077_p3 = scmp.ne.s32.totalorder %s1489_s29, %s1076_s26  ;;  %p1081_p5 = scmp.lt.u32.totalorder %s1489_s29, %s1585_s3 }
 0x160   : > { %p1082_p4 = scmp.lt.u32.totalorder %s1080_s14, %s1076_s26  ;;  %p1084_p9 = scmp.lt.u32.totalorder %s1076_s26, %s1489_s29 }
 0x161   : > { %p1078_p2 = pnand %p1077_p3, %p1602_p11 }
 0x162   : > { %p1083_p8 = por %p1082_p4, %p1081_p5 }
 0x163   : > { %p1079_p13 = pneg %p1078_p2 }
 0x164   : > { %p1085_p7 = por %p1084_p9, %p1083_p8 }
 0x166   : > { %p1086_p12 = pnand %p1085_p7, %p1079_p13 }
 0x168   : > { %1089 = shalt.err (!%p1086_p12)
}
 0x169   : > { %s1192_s25 = smov 128   ;;  %s1193_s12 = smov 8  }
 0x16a   : > { %894 = dma.vmem_to_hbm [thread:$0]  (%p1602_p11), %s1491_s8, 1536, %s1489_s29, %s609_s11, %s1192_s25, %s1192_s25, %s1193_s12  }
 0x16b   : > { %s614_s21 = scalar_lea.sflag [#allocation10], %s1409_s9  ;;  %s1090_s23 = scalar_lea.vmem %s1475_s30, 1024 }
 0x16c   : > { %p1091_p0 = scmp.ne.s32.totalorder %s1475_s30, %s1090_s23  ;;  %s1194_s7 = smov [#allocation9]  }
 0x16d   : > { %s1094_s26 = sshll.u32 %s1194_s7, 4  ;;  %s1095_s26 = int_to_ptr.vmem [resolvable:$false] %s1094_s26 }
 0x16e   : > { %p1092_p1 = pnand %p1091_p0, %p1602_p11  ;;  %s1096_s6 = scalar_lea.vmem %s1095_s26, 2048 }
 0x16f   : > { %p1097_p10 = scmp.lt.s32.totalorder %s1475_s30, %s1095_s26  ;;  %p1098_p3 = scmp.lt.s32.totalorder %s1096_s6, %s1090_s23 }
 0x170   : > { %p1093_p6 = pneg %p1092_p1 }
 0x171   : > { %p1099_p2 = por %p1098_p3, %p1097_p10 }
 0x173   : > { %p1100_p13 = pnand %p1099_p2, %p1093_p6 }
 0x175   : > { %1103 = shalt.err (!%p1100_p13)
}
 0x176   : > { %s1104_s8 = scalar_lea.hbm %s1499_s18, 1024  ;;  %s1108_s5 = scalar_lea.hbm %s1586_s4, 2048 }
 0x177   : > { %p1105_p5 = scmp.ne.s32.totalorder %s1499_s18, %s1104_s8  ;;  %p1109_p9 = scmp.lt.u32.totalorder %s1499_s18, %s1586_s4 }
 0x178   : > { %p1110_p7 = scmp.lt.u32.totalorder %s1108_s5, %s1104_s8  ;;  %p1112_p0 = scmp.lt.u32.totalorder %s1104_s8, %s1499_s18 }
 0x179   : > { %p1106_p4 = pnand %p1105_p5, %p1602_p11 }
 0x17a   : > { %p1111_p12 = por %p1110_p7, %p1109_p9 }
 0x17b   : > { %p1107_p8 = pneg %p1106_p4 }
 0x17c   : > { %p1113_p1 = por %p1112_p0, %p1111_p12 }
 0x17e   : > { %p1114_p6 = pnand %p1113_p1, %p1107_p8 }
 0x180   : > { %1117 = shalt.err (!%p1114_p6)
}
 0x181   : > { %895 = dma.vmem_to_hbm [thread:$0]  (%p1602_p11), %s1475_s30, 1024, %s1499_s18, %s614_s21, %s1192_s25, %s1192_s25, %s1193_s12  }
 0x182 PF: > { %s660_s10 = sand.u32 1, %s1164_s15   ;;  %p1603_p10 = scmp.ne.s32.totalorder %s1591_s24, 0 }
 0x183   : > { %p1604_p3 = scmp.ge.s32.totalorder %s1184_s20, 2  ;;  %s661_s23 = scalar_lea.sflag [#allocation4], %s660_s10 }
 0x185   : > { %p910_p2 = pnand %p1604_p3, %p1603_p10 }
 0x187   : > { %1155 = dma.done.wait (!%p910_p2), %s661_s23, 1536  }
 0x188   : > { %1157 = vsyncadd (!%p910_p2), %s661_s23, 4294965760  ;;  %s670_s28 = scalar_lea.sflag [#allocation10], %s660_s10 }
 0x189   : > { %1159 = dma.done.wait (!%p910_p2), %s670_s28, 1024  }
 0x18a   : > { %1161 = vsyncadd (!%p910_p2), %s670_s28, 4294966272  ;;  %s23_s20 = sadd.s32 1, %s1184_s20   ;;  %s1605_s15 = smov %s1168_s16 }
 0x18b   : > { %p20_p13 = scmp.ge.s32.totalorder %s23_s20, 4   ;;  %s1606_s16 = smov %s1172_s17 }
 0x18c   : > { %s1607_s17 = smov %s1359_s13  ;;  %s1608_s18 = smov %s1180_s19 }
 0x18d   : > { %s1609_s19 = smov %s1611_s22  ;;  %22 = sbr.rel (!%p20_p13) target bundleno = 8 (0x8), region = 101 }
 0x194   :  { %675 = vsyncpa [#allocation3], 1 }
 0x195   :  { %677 = vsyncpa [#allocation3 + $0x1], 1 }
 0x196   :  { %678 = vsyncpa [#allocation6], 1 }
 0x197   :  { %679 = vsyncpa [#allocation4], 1 }
 0x198   :  { %681 = vsyncpa [#allocation4 + $0x1], 1 }
 0x199   :  { %682 = vsyncpa [#allocation10], 1 }
 0x19a   :  { %684 = vsyncpa [#allocation10 + $0x1], 1 }

</bundles_post_ra>
